<compile_context>
chip_gen: v7x
topology: tpu7x:2x2x1
jax: 0.10.0
libtpu: 0.0.40
codegen_flags: <defaults>
</compile_context>

<pallas_src>
import functools

import jax
import jax.numpy as jnp
from jax.experimental import pallas as pl
from jax.experimental.pallas import tpu as pltpu


# ---------------------------------------------------------------------------
# Host-side hardware hints (all guarded; safe defaults if queries fail)
# ---------------------------------------------------------------------------

def _vmem_capacity_bytes() -> int:
    try:
        info = pltpu.get_tpu_info()
        cap = getattr(info, "vmem_capacity_bytes", None)
        if cap:
            return int(cap)
    except Exception:
        pass
    return 64 << 20  # conservative (v7x-sized) default


def _num_tensorcores() -> int:
    """2 on dual-TensorCore / megacore chips (v4, v5p, v7x), else 1 (v5e, v6e)."""
    try:
        kind = jax.devices()[0].device_kind.lower()
    except Exception:
        return 1
    return 2 if any(tag in kind for tag in ("v4", "v5p", "v7", "7x")) else 1


def _choose_tile_n(n_rows: int, num_classes: int) -> int:
    """Row-tile size from a f32 byte budget on the lane-padded class dim.

    In-kernel temporaries are f32 regardless of the input dtype, so the budget is
    always in f32 bytes (review: drop the bf16 '8 MiB' branch)."""
    cap = _vmem_capacity_bytes()
    slab_budget = (8 << 20) if cap >= (100 << 20) else (4 << 20)   # v5e/v6e vs v7x
    c_pad = max(128, -(-num_classes // 128) * 128)                  # lane padding
    rows = slab_budget // (c_pad * 4)
    rows = max(16, (rows // 16) * 16)
    rows = min(rows, 2048)
    rows_needed = -(-n_rows // 8) * 8
    return int(max(8, min(rows, rows_needed)))


# ---------------------------------------------------------------------------
# Kernels
# ---------------------------------------------------------------------------

def _softmax_pieces(pred_ref):
    """Stable log-softmax pieces; no (tile_n, C) log_prob is materialized."""
    pred = pred_ref[...].astype(jnp.float32)                 # (tile_n, C) f32
    row_max = jnp.max(pred, axis=-1, keepdims=True)          # (tile_n, 1)
    shifted = pred - row_max                                 # (tile_n, C)
    lse = jnp.log(jnp.sum(jnp.exp(shifted), axis=-1, keepdims=True))
    sum_shifted = jnp.sum(shifted, axis=-1, keepdims=True)
    return shifted, lse, sum_shifted


def _mask_and_accumulate(out_ref, loss, *, n_valid, tile_n, tiles_per_split):
    """Select-mask ragged-tail rows (0*NaN safe) and add the tile's scalar sum."""
    s = pl.program_id(0)
    t = pl.program_id(1)
    row0 = (s * tiles_per_split + t) * tile_n
    row_ids = row0 + jax.lax.broadcasted_iota(jnp.int32, loss.shape, 0)
    loss = jnp.where(row_ids < n_valid, loss, 0.0)
    out_ref[...] = out_ref[...] + jnp.sum(loss)


def _ls_ce_single_kernel(pred_ref, tgt_ref, out_ref, iota_ref, *,
                         smoothing, n_valid, tile_n, tiles_per_split):
    t = pl.program_id(1)

    @pl.when(t == 0)
    def _():
        out_ref[...] = jnp.zeros_like(out_ref)
        iota_ref[...] = jax.lax.broadcasted_iota(jnp.int32, iota_ref.shape, 1)

    shifted, lse, sum_shifted = _softmax_pieces(pred_ref)
    num_classes = shifted.shape[-1]

    # Gather shifted logit at the target class via a masked lane-reduce.
    g = jnp.sum(jnp.where(iota_ref[...] == tgt_ref[...], shifted, 0.0),
                axis=-1, keepdims=True)                              # (tile_n, 1)

    on = jnp.float32(1.0 - smoothing)
    off = jnp.float32(smoothing / (num_classes - 1))
    loss = lse - off * sum_shifted - (on - off) * g                  # (tile_n, 1)

    _mask_and_accumulate(out_ref, loss, n_valid=n_valid, tile_n=tile_n,
                         tiles_per_split=tiles_per_split)


def _ls_ce_mixup_kernel(lam_ref, pred_ref, ta_ref, tb_ref, out_ref, iota_ref, *,
                        smoothing, n_valid, tile_n, tiles_per_split):
    t = pl.program_id(1)

    @pl.when(t == 0)
    def _():
        out_ref[...] = jnp.zeros_like(out_ref)
        iota_ref[...] = jax.lax.broadcasted_iota(jnp.int32, iota_ref.shape, 1)

    shifted, lse, sum_shifted = _softmax_pieces(pred_ref)
    num_classes = shifted.shape[-1]

    lam = lam_ref[0]
    col_ids = iota_ref[...]
    # lam*1{c==ta} + (1-lam)*1{c==tb}; when ta==tb the weights sum to 1, which is
    # exactly lam*loss_a + (1-lam)*loss_b.
    w = (jnp.where(col_ids == ta_ref[...], lam, 0.0)
         + jnp.where(col_ids == tb_ref[...], 1.0 - lam, 0.0))
    g = jnp.sum(shifted * w, axis=-1, keepdims=True)                 # (tile_n, 1)

    on = jnp.float32(1.0 - smoothing)
    off = jnp.float32(smoothing / (num_classes - 1))
    loss = lse - off * sum_shifted - (on - off) * g   # lam-combined per-row loss

    _mask_and_accumulate(out_ref, loss, n_valid=n_valid, tile_n=tile_n,
                         tiles_per_split=tiles_per_split)


# ---------------------------------------------------------------------------
# Host wrapper
# ---------------------------------------------------------------------------

def _loss_sum(pred, targets, lam, smoothing: float, tile_n):
    """Sum over rows of the (lam-combined, if mixup) smoothed per-row loss.

    `targets` is a tuple of one (non-mixup) or two (mixup) (N,) int arrays.
    No padding of pred: the grid covers the ragged tail via partial blocks."""
    n, c = pred.shape
    if tile_n is None:
        tile_n = _choose_tile_n(n, c)
    tile_n = max(8, (int(tile_n) // 8) * 8)

    tiles_total = -(-n // tile_n)
    n_splits = _num_tensorcores() if tiles_total >= 2 else 1
    tiles_per_split = -(-tiles_total // n_splits)
    last_block = tiles_total - 1

    if n_splits == 1:
        def block_map(s, t):
            return (t, 0)
    else:
        # Clamp so a split's trailing grid point never maps to a fully OOB block;
        # its rows are masked out by the in-kernel row mask anyway.
        def block_map(s, t):
            return (jnp.minimum(s * tiles_per_split + t, last_block), 0)

    args = []
    in_specs = []
    if lam is not None:
        args.append(jnp.asarray(lam, dtype=jnp.float32).reshape((1,)))
        in_specs.append(pl.BlockSpec(memory_space=pltpu.MemorySpace.SMEM))
    args.append(pred)
    in_specs.append(pl.BlockSpec((tile_n, c), block_map))
    for tgt in targets:
        args.append(tgt.astype(jnp.int32).reshape(n, 1))
        in_specs.append(pl.BlockSpec((tile_n, 1), block_map))

    common = dict(smoothing=float(smoothing), n_valid=n, tile_n=tile_n,
                  tiles_per_split=tiles_per_split)
    if lam is None:
        kernel = functools.partial(_ls_ce_single_kernel, **common)
    else:
        kernel = functools.partial(_ls_ce_mixup_kernel, **common)

    vmem_cap = _vmem_capacity_bytes()
    vmem_limit = (48 << 20) if vmem_cap <= (64 << 20) else (96 << 20)

    out = pl.pallas_call(
        kernel,
        out_shape=jax.ShapeDtypeStruct((n_splits, 1, 1), jnp.float32),
        grid_spec=pltpu.PrefetchScalarGridSpec(
            num_scalar_prefetch=0,
            grid=(n_splits, tiles_per_split),
            in_specs=in_specs,
            out_specs=pl.BlockSpec((1, 1, 1), lambda s, t: (s, 0, 0)),
            scratch_shapes=[pltpu.VMEM((tile_n, c), jnp.int32)],   # hoisted col iota
        ),
        compiler_params=pltpu.CompilerParams(
            dimension_semantics=("parallel", "arbitrary"),
            vmem_limit_bytes=vmem_limit,
        ),
    )(*args)
    return jnp.sum(out)


def label_smoothing_cross_entropy(pred, target, smoothing: float = 0.1, *,
                                  tile_n: int | None = None):
    """Matches LabelSmoothingCrossEntropy.forward.

    `target` may be an int array (N,) or a tuple (target_a, target_b, lam) for mixup.
    Both paths read pred from HBM exactly once."""
    n = pred.shape[0]
    if isinstance(target, tuple):
        target_a, target_b, lam = target
        total = _loss_sum(pred, (target_a, target_b), lam, smoothing, tile_n)
        return total / n
    total = _loss_sum(pred, (target,), None, smoothing, tile_n)
    return total / n


# ---------------------------------------------------------------------------
# Pure-JAX reference + tests
# ---------------------------------------------------------------------------

def _reference(pred, target, smoothing: float = 0.1):
    num_classes = pred.shape[-1]
    log_prob = jax.nn.log_softmax(pred.astype(jnp.float32), axis=-1)
    smooth = jnp.full_like(log_prob, smoothing / (num_classes - 1))
    smooth = smooth.at[jnp.arange(pred.shape[0]), target].set(1.0 - smoothing)
    return jnp.mean(jnp.sum(-smooth * log_prob, axis=-1))


if __name__ == "__main__":
    key = jax.random.PRNGKey(0)
    k1, k2, k3, k4, k5, k6, k7, k8 = jax.random.split(key, 8)

    # --- 1) Small f32, single target, single tile ----------------------------
    N, C = 8, 32
    pred = jax.random.normal(k1, (N, C), dtype=jnp.float32)
    target_a = jax.random.randint(k2, (N,), 0, C, dtype=jnp.int32)
    target_b = jax.random.randint(k3, (N,), 0, C, dtype=jnp.int32)

    loss = jax.block_until_ready(label_smoothing_cross_entropy(pred, target_a, 0.1))
    ref = _reference(pred, target_a, 0.1)
    assert jnp.allclose(loss, ref, atol=2e-5, rtol=2e-5), (loss, ref)

    # --- 2) Mixup (lam fused in-kernel via SMEM scalar) -----------------------
    lam = 0.7
    loss_mix = jax.block_until_ready(
        label_smoothing_cross_entropy(pred, (target_a, target_b, lam), 0.1))
    ref_mix = lam * _reference(pred, target_a, 0.1) + (1 - lam) * _reference(pred, target_b, 0.1)
    assert jnp.allclose(loss_mix, ref_mix, atol=2e-5, rtol=2e-5), (loss_mix, ref_mix)

    # --- 3) bf16, ragged N: partial last block + tail masking (no host pad) ---
    N2, C2 = 50, 96
    pred2 = jax.random.normal(k4, (N2, C2), dtype=jnp.float32).astype(jnp.bfloat16)
    t2 = jax.random.randint(k5, (N2,), 0, C2, dtype=jnp.int32)
    loss2 = jax.block_until_ready(
        label_smoothing_cross_entropy(pred2, t2, 0.1, tile_n=8))
    ref2 = _reference(pred2.astype(jnp.float32), t2, 0.1)
    assert jnp.allclose(loss2, ref2, atol=1e-3, rtol=1e-3), (loss2, ref2)

    # --- 4) Mixup + ragged N, multiple tiles ----------------------------------
    N3, C3 = 20, 40
    pred3 = jax.random.normal(k6, (N3, C3), dtype=jnp.float32)
    ta3 = jax.random.randint(k7, (N3,), 0, C3, dtype=jnp.int32)
    tb3 = jax.random.randint(k8, (N3,), 0, C3, dtype=jnp.int32)
    lam3 = 0.3
    loss3 = jax.block_until_ready(
        label_smoothing_cross_entropy(pred3, (ta3, tb3, lam3), 0.1, tile_n=8))
    ref3 = lam3 * _reference(pred3, ta3, 0.1) + (1 - lam3) * _reference(pred3, tb3, 0.1)
    assert jnp.allclose(loss3, ref3, atol=2e-5, rtol=2e-5), (loss3, ref3)

    print("KERNEL_OK")
</pallas_src>

<mosaic_0001>
module attributes {stable_mosaic.version = 11 : i64} {
  func.func @_ls_ce_single_kernel(%arg0: i32, %arg1: i32, %arg2: memref<8x32xf32, #tpu.memory_space<vmem>>, %arg3: memref<8x1xi32, #tpu.memory_space<vmem>>, %arg4: memref<1x1x1xf32, #tpu.memory_space<vmem>>, %arg5: memref<8x32xi32, #tpu.memory_space<vmem>>) attributes {dimension_semantics = [#tpu.dimension_semantics<parallel>, #tpu.dimension_semantics<arbitrary>], iteration_bounds = array<i64: 1, 1>, scalar_prefetch = 0 : i64, scratch_operands = 1 : i64, tpu.core_type = #tpu.core_type<tc>, window_params = [{transform_indices = @transform_0, window_bounds = array<i64: 8, 32>}, {transform_indices = @transform_1, window_bounds = array<i64: 8, 1>}, {transform_indices = @transform_2, window_bounds = array<i64: 1, 1, 1>}]} {
    %c0_i32 = arith.constant 0 : i32
    %0 = arith.cmpi eq, %arg1, %c0_i32 : i32
    %1 = arith.extui %0 : i1 to i32
    %c0_i32_0 = arith.constant 0 : i32
    %2 = arith.cmpi ne, %1, %c0_i32_0 : i32
    scf.if %2 {
      %cst_22 = arith.constant 0.000000e+00 : f32
      %47 = vector.broadcast %cst_22 : f32 to vector<1x1x1xf32>
      %c0_23 = arith.constant 0 : index
      %c0_24 = arith.constant 0 : index
      %c0_25 = arith.constant 0 : index
      %48 = vector.load %arg4[%c0_23, %c0_24, %c0_25] : memref<1x1x1xf32, #tpu.memory_space<vmem>>, vector<1x1x1xf32>
      tpu.vector_store %arg4[%c0_23, %c0_24, %c0_25], %47 {strides = array<i32>} : memref<1x1x1xf32, #tpu.memory_space<vmem>>, vector<1x1x1xf32>,
      %49 = tpu.iota {dimensions = array<i32: 1>} : vector<8x32xi32>
      %c0_26 = arith.constant 0 : index
      %c0_27 = arith.constant 0 : index
      %50 = vector.load %arg5[%c0_26, %c0_27] : memref<8x32xi32, #tpu.memory_space<vmem>>, vector<8x32xi32>
      tpu.vector_store %arg5[%c0_26, %c0_27], %49 {strides = array<i32>} : memref<8x32xi32, #tpu.memory_space<vmem>>, vector<8x32xi32>,
    } else {
    }
    %c0 = arith.constant 0 : index
    %c0_1 = arith.constant 0 : index
    %3 = vector.load %arg2[%c0, %c0_1] : memref<8x32xf32, #tpu.memory_space<vmem>>, vector<8x32xf32>
    %cst = arith.constant dense<0xFF800000> : vector<8xf32>
    %4 = vector.multi_reduction <maximumf>, %3, %cst [1] : vector<8x32xf32> to vector<8xf32>
    %5 = vector.shape_cast %4 : vector<8xf32> to vector<8x1xf32>
    %6 = vector.broadcast %5 : vector<8x1xf32> to vector<8x32xf32>
    %7 = arith.subf %3, %6 : vector<8x32xf32>
    %8 = math.exp %7 : vector<8x32xf32>
    %cst_2 = arith.constant dense<0.000000e+00> : vector<8xf32>
    %9 = vector.multi_reduction <add>, %8, %cst_2 [1] : vector<8x32xf32> to vector<8xf32>
    %10 = vector.shape_cast %9 : vector<8xf32> to vector<8x1xf32>
    %11 = math.log %10 : vector<8x1xf32>
    %cst_3 = arith.constant dense<0.000000e+00> : vector<8xf32>
    %12 = vector.multi_reduction <add>, %7, %cst_3 [1] : vector<8x32xf32> to vector<8xf32>
    %13 = vector.shape_cast %12 : vector<8xf32> to vector<8x1xf32>
    %c0_4 = arith.constant 0 : index
    %c0_5 = arith.constant 0 : index
    %14 = vector.load %arg5[%c0_4, %c0_5] : memref<8x32xi32, #tpu.memory_space<vmem>>, vector<8x32xi32>
    %c0_6 = arith.constant 0 : index
    %c0_7 = arith.constant 0 : index
    %15 = vector.load %arg3[%c0_6, %c0_7] : memref<8x1xi32, #tpu.memory_space<vmem>>, vector<8x1xi32>
    %16 = vector.broadcast %15 : vector<8x1xi32> to vector<8x32xi32>
    %17 = arith.cmpi eq, %14, %16 : vector<8x32xi32>
    %cst_8 = arith.constant 0.000000e+00 : f32
    %18 = vector.broadcast %cst_8 : f32 to vector<8x32xf32>
    %19 = arith.select %17, %7, %18 : vector<8x32xi1>, vector<8x32xf32>
    %cst_9 = arith.constant dense<0.000000e+00> : vector<8xf32>
    %20 = vector.multi_reduction <add>, %19, %cst_9 [1] : vector<8x32xf32> to vector<8xf32>
    %21 = vector.shape_cast %20 : vector<8xf32> to vector<8x1xf32>
    %cst_10 = arith.constant 0.0032258064 : f32
    %22 = vector.broadcast %cst_10 : f32 to vector<8x1xf32>
    %23 = arith.mulf %22, %13 : vector<8x1xf32>
    %24 = arith.subf %11, %23 : vector<8x1xf32>
    %cst_11 = arith.constant 0.899999976 : f32
    %cst_12 = arith.constant 0.0032258064 : f32
    %25 = arith.subf %cst_11, %cst_12 : f32
    %26 = vector.broadcast %25 : f32 to vector<8x1xf32>
    %27 = arith.mulf %26, %21 : vector<8x1xf32>
    %28 = arith.subf %24, %27 : vector<8x1xf32>
    %c1_i32 = arith.constant 1 : i32
    %29 = arith.muli %arg0, %c1_i32 : i32
    %30 = arith.addi %29, %arg1 : i32
    %c8_i32 = arith.constant 8 : i32
    %31 = arith.muli %30, %c8_i32 : i32
    %32 = tpu.iota {dimensions = array<i32: 0>} : vector<8x1xi32>
    %33 = vector.broadcast %31 : i32 to vector<8x1xi32>
    %34 = arith.addi %33, %32 : vector<8x1xi32>
    %c8_i32_13 = arith.constant 8 : i32
    %35 = vector.broadcast %c8_i32_13 : i32 to vector<8x1xi32>
    %36 = arith.cmpi slt, %34, %35 : vector<8x1xi32>
    %cst_14 = arith.constant 0.000000e+00 : f32
    %37 = vector.broadcast %cst_14 : f32 to vector<8x1xf32>
    %38 = arith.select %36, %28, %37 : vector<8x1xi1>, vector<8x1xf32>
    %c0_15 = arith.constant 0 : index
    %c0_16 = arith.constant 0 : index
    %c0_17 = arith.constant 0 : index
    %39 = vector.load %arg4[%c0_15, %c0_16, %c0_17] : memref<1x1x1xf32, #tpu.memory_space<vmem>>, vector<1x1x1xf32>
    %40 = vector.shape_cast %38 : vector<8x1xf32> to vector<1x8x1xf32>
    %cst_18 = arith.constant dense<0.000000e+00> : vector<1xf32>
    %41 = vector.multi_reduction <add>, %40, %cst_18 [1, 2] : vector<1x8x1xf32> to vector<1xf32>
    %42 = vector.shape_cast %41 : vector<1xf32> to vector<1x1x1xf32>
    %43 = vector.extract %42[0, 0, 0] : f32 from vector<1x1x1xf32>
    %44 = vector.broadcast %43 : f32 to vector<1x1x1xf32>
    %45 = arith.addf %39, %44 : vector<1x1x1xf32>
    %c0_19 = arith.constant 0 : index
    %c0_20 = arith.constant 0 : index
    %c0_21 = arith.constant 0 : index
    %46 = vector.load %arg4[%c0_19, %c0_20, %c0_21] : memref<1x1x1xf32, #tpu.memory_space<vmem>>, vector<1x1x1xf32>
    tpu.vector_store %arg4[%c0_19, %c0_20, %c0_21], %45 {strides = array<i32>} : memref<1x1x1xf32, #tpu.memory_space<vmem>>, vector<1x1x1xf32>,
    return
  }
  func.func @transform_0(%arg0: i32, %arg1: i32) -> (i32, i32) {
    %c0_i32 = arith.constant 0 : i32
    %c0_i32_0 = arith.constant 0 : i32
    return %arg1, %c0_i32 : i32, i32
  }
  func.func @transform_1(%arg0: i32, %arg1: i32) -> (i32, i32) {
    %c0_i32 = arith.constant 0 : i32
    %c0_i32_0 = arith.constant 0 : i32
    return %arg1, %c0_i32 : i32, i32
  }
  func.func @transform_2(%arg0: i32, %arg1: i32) -> (i32, i32, i32) {
    %c0_i32 = arith.constant 0 : i32
    %c0_i32_0 = arith.constant 0 : i32
    %c0_i32_1 = arith.constant 0 : i32
    return %arg0, %c0_i32, %c0_i32_0 : i32, i32, i32
  }
}

</mosaic_0001>

<bundles_post_ra>
// kernel: tpu_custom_call.1
= control target key start
LH: loop header
LB: loop body
LE: loop exit
PB: predicated region body
PF: predicated region fallthrough
CT: control target
= control target key end

     0   :  { %vm20_vm0 = vcmask 261120   ;;  %v18_v1 = vlaneseq  ;;  %s167_s0 = inlined_call_operand.vmem [shape: f32[8,32], index: 0, kind: input, shape index: {}]   ;;  %s168_s1 = inlined_call_operand.vmem [shape: s32[8,1], index: 1, kind: input, shape index: {}]   ;;  %s169_s2 = inlined_call_operand.hbm [shape: f32[1,1,1], index: 2, kind: output, shape index: {}]  }
   0x1   :  { %v22_v0 = vld [vmem:[%s167_s0] sm:$0xff] }
   0x2   :  { %7 = vsyncpa [#allocation4], 0  ;;  %v24_v2 = vsel %vm20_vm0, %v22_v0, -inf  ;;  %v124_v3 = vmov 0   ;;  %v19_v4 = vand.u32 127, %v18_v1  ;;  %v39_v5 = vld [vmem:[%s168_s1] sm:$0xff] }
   0x3   :  { %95 = vset.pattern.permute.xlu0 %v124_v3  ;;  %vm61_vm2 = vcmask 7168   ;;  %vm16_vm3 = vcmask 0   ;;  %v125_v26 = vmov 0.0   ;;  %s126_s0 = smov [#allocation3]  }
   0x4   :  { %25 = vmax.xlane.f32.xlu0 %v24_v2  ;;  %21 = vst.msk [vmem:[#allocation2] sm:$0xff] %vm20_vm0, %v19_v4  ;;  %s82_s1 = sshll.u32 %s126_s0, 4  ;;  %s83_s1 = int_to_ptr.vmem [resolvable:$true] %s82_s1 }
   0x5   :  { %17 = vst.msk [vmem:[#allocation3] sm:$0x1] %vm16_vm3, %v125_v26  ;;  %s100_s14 = scalar_lea.vmem %s83_s1, 16  ;;  %s104_s15 = scalar_lea.vmem %s83_s1, 32 }
   0x6   :  { %p101_p0 = scmp.ne.s32.totalorder %s83_s1, %s100_s14  ;;  %p105_p1 = scmp.lt.s32.totalorder %s83_s1, %s83_s1 }
   0x7   :  { %p106_p2 = scmp.lt.s32.totalorder %s104_s15, %s100_s14 }
   0x9   :  { %p107_p3 = por %p106_p2, %p105_p1 }
   0xb   :  { %v38_v11 = vld [vmem:[#allocation2] sm:$0xff]  ;;  %p108_p4 = pnand %p107_p3, %p101_p0 }
   0xc   :  { %v60_v34 = vld [vmem:[#allocation3] sm:$0x1] }
  0x1a   :  { %41 = vperm.xlu0 %95, %v39_v5  }
  0x91   :  { %v26_v6 = vpop.xlane.xlu0 %25 }
  0x92   :  { %v27_v7 = vsub.f32 %v22_v0, %v26_v6 }
  0x94   :  { %v28_v8 = vmul.f32 1.442695, %v27_v7  ;;  %v35_v13 = vsel %vm20_vm0, %v27_v7, 0.0 }
  0x96   :  { %96 = vpow2.f32 %v28_v8 }
  0x99   :  { %v42_v10 = vpop.permute.xlu0 %41 }
  0x9a   :  { %vm43_vm1 = vcmp.eq.s32.totalorder %v38_v11, %v42_v10 }
  0x9b   :  { %v44_v14 = vsel %vm43_vm1, %v27_v7, 0.0 }
  0x9c   :  { %v45_v15 = vsel %vm20_vm0, %v44_v14, 0.0 }
  0xa0   :  { %v97_v9 = vpop.eup %96 }
  0xa1   :  { %v30_v12 = vsel %vm20_vm0, %v97_v9, 0.0 }
  0xa2   :  { %31 = vadd.xlane.f32.xlu1 %v30_v12 }
  0xa6   :  { %36 = vadd.xlane.f32.xlu1 %v35_v13 }
  0xaa   :  { %46 = vadd.xlane.f32.xlu1 %v45_v15 }
 0x12f   :  { %v32_v16 = vpop.xlane.xlu1 %31 }
 0x130   :  { %98 = vlog2.f32 %v32_v16 }
 0x133   :  { %v37_v17 = vpop.xlane.xlu1 %36 }
 0x134   :  { %v48_v21 = vmul.f32 0.0032258064, %v37_v17 }
 0x137   :  { %v47_v19 = vpop.xlane.xlu1 %46 }
 0x138   :  { %v50_v23 = vmul.f32 0.8967742, %v47_v19 }
 0x13a   :  { %v99_v18 = vpop.eup %98 }
 0x13b   :  { %v34_v20 = vmul.f32 0.6931472, %v99_v18 }
 0x13d   :  { %v49_v22 = vsub.f32 %v34_v20, %v48_v21 }
 0x13f   :  { %v51_v24 = vsub.f32 %v49_v22, %v50_v23 }
 0x141   :  { %v62_v25 = vsel %vm61_vm2, %v51_v24, 0.0 }
 0x142   :  { %63 = vadd.xlane.f32.xlu1 %v62_v25 }
 0x1cf   :  { %v64_v27 = vpop.xlane.xlu1 %63 }
 0x1d0   :  { %v65_v28 = vrot.slane %v64_v27, 4 }
 0x1d2   :  { %v66_v29 = vadd.f32 %v65_v28, %v64_v27 }
 0x1d4   :  { %v67_v30 = vrot.slane %v66_v29, 2 }
 0x1d6   :  { %v68_v31 = vadd.f32 %v67_v30, %v66_v29 }
 0x1d8   :  { %v69_v32 = vrot.slane %v68_v31, 1 }
 0x1da   :  { %v70_v33 = vadd.f32 %v69_v32, %v68_v31 }
 0x1dc   :  { %90 = vpush %v70_v33 }
 0x20d   :  { %s91_s13 = spop %90 }
 0x20e   :  { %v72_v35 = vstv %s91_s13 }
 0x20f   :  { %v73_v36 = vadd.f32 %v72_v35, %v60_v34 }
 0x211   :  { %75 = vst.msk [vmem:[#allocation3] sm:$0x1] %vm16_vm3, %v73_v36 }
 0x212   :  { %111 = shalt.err (!%p108_p4)
}
 0x213   :  { %s112_s18 = scalar_lea.hbm %s169_s2, 16 }
 0x214   :  { %p113_p5 = scmp.ne.s32.totalorder %s169_s2, %s112_s18  ;;  %p116_p6 = scmp.lt.u32.totalorder %s112_s18, %s169_s2 }
 0x216   :  { %p118_p7 = pnand %p116_p6, %p113_p5 }
 0x218   :  { %121 = shalt.err (!%p118_p7)
}
 0x219   :  { %85 = dma.vmem_to_hbm [thread:$0]  %s83_s1, 16, %s169_s2, [#allocation4]  }
 0x21a   :  { %122 = dma.done.wait [#allocation4], 16  }
 0x21b   :  { %123 = vsyncadd [#allocation4], 4294967280 }
 0x21c   :  { %89 = vsyncpa [#allocation4], 1 }

</bundles_post_ra>
